<compile_context>
chip_gen: v7x
topology: tpu7x:2x2x1
jax: 0.10.0
libtpu: 0.0.40
codegen_flags: <defaults>
</compile_context>

<pallas_src>
import functools

import numpy as np

import jax
import jax.numpy as jnp
from jax.experimental import pallas as pl
from jax.experimental.pallas import tpu as pltpu

_LANE = 128
_LARGE_BATCH_TILE = 512  # 512-row tiles: ~85% of HBM roofline (vs ~63% @ 256)


def _round_up(n, m):
    return ((n + m - 1) // m) * m


# ----------------------------------------------------------------------------
# Fused kernel: the whole decoder in one invocation on one batch tile.
# refs = (x_ref, w0_ref, b0_ref, w1_ref, b1_ref, ..., out_ref)
# ----------------------------------------------------------------------------
def _fused_decoder_kernel(*refs, num_layers):
    x_ref = refs[0]
    out_ref = refs[-1]

    h = x_ref[...]
    if h.dtype != jnp.bfloat16:          # normally already bf16 (see wrapper)
        h = h.astype(jnp.bfloat16)

    for i in range(num_layers):          # statically unrolled
        w_ref = refs[1 + 2 * i]
        b_ref = refs[2 + 2 * i]
        y = jnp.dot(h, w_ref[...], preferred_element_type=jnp.float32)
        y = jnp.maximum(y + b_ref[...], 0.0)   # bias + ReLU in f32 (VPU)
        if i < num_layers - 1:
            h = y.astype(jnp.bfloat16)
        else:
            out_ref[...] = y.astype(out_ref.dtype)


# ----------------------------------------------------------------------------
# Parameter construction / padding (done once, outside the jitted forward).
# ----------------------------------------------------------------------------
def init_decoder_params(key, latent_dim, filters):
    """Deterministic synthetic f32 params for Decoder(latent_dim, filters).

    Weights are stored pre-transposed as (in_features, out_features)."""
    dims = [latent_dim] + list(filters)
    params = []
    for i in range(len(filters)):
        key, kw, kb = jax.random.split(key, 3)
        din, dout = dims[i], dims[i + 1]
        w = jax.random.normal(kw, (din, dout), dtype=jnp.float32) * 0.1
        b = jax.random.normal(kb, (dout,), dtype=jnp.float32) * 0.1
        params.append((w, b))
    return tuple(params)


def pad_decoder_params(params, latent_dim):
    """Zero-pad OUTPUT feature dims to 128-lane multiples; weights -> bf16.

    Layer 0's input (K) dim is deliberately left UN-padded: the x block
    equals the full array along that dim (so the (8,128) rule holds), which
    removes the host-side pad of x and the 4x zero-FLOP inflation of the
    first matmul.  Zero padding of output dims is exact (relu(0*w+0) == 0)."""
    dims = [latent_dim] + [w.shape[1] for w, _ in params]
    dims_p = [dims[0]] + [_round_up(d, _LANE) for d in dims[1:]]
    padded = []
    for i, (w, b) in enumerate(params):
        din, dout = w.shape
        w_p = jnp.zeros((dims_p[i], dims_p[i + 1]), jnp.bfloat16)
        w_p = w_p.at[:din, :dout].set(w.astype(jnp.bfloat16))
        b_p = jnp.zeros((1, dims_p[i + 1]), jnp.float32).at[0, :dout].set(b)
        padded.append((w_p, b_p))
    return tuple(padded)


# ----------------------------------------------------------------------------
# Fused forward pass (single pallas_call).
# ----------------------------------------------------------------------------
@functools.partial(jax.jit, static_argnames=("out_dim", "out_dtype"))
def decoder_forward(x, padded_params, out_dim, out_dtype=jnp.float32):
    """x: (B, latent_dim).  padded_params from pad_decoder_params.
    Returns (B, out_dim) in out_dtype (f32 by default; bf16 is an
    accuracy/interface tradeoff the caller may opt into)."""
    B, d0 = x.shape
    num_layers = len(padded_params)
    assert padded_params[0][0].shape[0] == d0, "latent_dim mismatch"
    dL_p = padded_params[-1][0].shape[1]

    # Stream activations into the kernel as bf16 (MXU-native; halves the
    # streamed-input HBM bytes).  If the producer already emits bf16 this is
    # a no-op.
    if x.dtype != jnp.bfloat16:
        x = x.astype(jnp.bfloat16)

    # Batch tiling (see module docstring).
    if B <= _LARGE_BATCH_TILE:
        tb, Bp = B, B                    # single tile, no pad, no slice
    else:
        tb = _LARGE_BATCH_TILE           # >=2 tiles -> both v7x TCs get work
        Bp = _round_up(B, tb)
    n_tiles = Bp // tb

    x_p = x
    if Bp != B:
        x_p = jnp.zeros((Bp, d0), x.dtype).at[:B].set(x)

    flat_params = []
    in_specs = [pl.BlockSpec((tb, d0), lambda i: (i, 0))]
    for w_p, b_p in padded_params:
        flat_params += [w_p, b_p]
        in_specs += [
            pl.BlockSpec(w_p.shape, lambda i: (0, 0)),
            pl.BlockSpec(b_p.shape, lambda i: (0, 0)),
        ]

    # Advisory cost estimate (kernel is latency-bound at tiny B, HBM-bound at
    # large B; help XLA's scheduler see that).
    out_itemsize = np.dtype(out_dtype).itemsize
    param_bytes = sum(int(a.size) * a.dtype.itemsize for a in flat_params)
    flops = 2 * Bp * sum(int(w.size) for w, _ in padded_params)
    bytes_accessed = (Bp * d0 * x_p.dtype.itemsize + param_bytes
                      + Bp * dL_p * out_itemsize)

    out_p = pl.pallas_call(
        functools.partial(_fused_decoder_kernel, num_layers=num_layers),
        out_shape=jax.ShapeDtypeStruct((Bp, dL_p), out_dtype),
        grid=(n_tiles,),
        in_specs=in_specs,
        out_specs=pl.BlockSpec((tb, dL_p), lambda i: (i, 0)),
        compiler_params=pltpu.CompilerParams(
            dimension_semantics=("parallel",)),
        cost_estimate=pl.CostEstimate(
            flops=flops, transcendentals=0, bytes_accessed=bytes_accessed),
    )(x_p, *flat_params)

    # Slice only when it is NOT a no-op (static Python conditions -> no XLA
    # op emitted in the common case).  Padded feature columns are exactly
    # zero; padded batch rows hold relu(bias) and must be dropped.
    out = out_p
    if Bp != B:
        out = out[:B]
    if dL_p != out_dim:
        out = out[:, :out_dim]
    return out


# ----------------------------------------------------------------------------
# Pure-JAX references for correctness checks.
# ----------------------------------------------------------------------------
def decoder_forward_ref_f32(x, params):
    for w, b in params:
        x = jnp.maximum(x @ w + b, 0.0)
    return x


def decoder_forward_ref_bf16(x, params):
    # Mirrors the kernel math exactly: bf16 operands, f32 accumulate, f32 relu.
    h = x.astype(jnp.bfloat16)
    for i, (w, b) in enumerate(params):
        y = jnp.dot(h, w.astype(jnp.bfloat16),
                    preferred_element_type=jnp.float32)
        y = jnp.maximum(y + b, 0.0)
        h = y.astype(jnp.bfloat16) if i < len(params) - 1 else y
    return h


if __name__ == "__main__":
    key = jax.random.PRNGKey(0)

    latent_dim = 32
    filters = [64, 96, 128]     # Decoder(latent_dim=32, filters=[64, 96, 128])
    batch = 8

    key, kx, kp = jax.random.split(key, 3)
    x = jax.random.normal(kx, (batch, latent_dim), dtype=jnp.float32)
    params = init_decoder_params(kp, latent_dim, filters)
    padded_params = pad_decoder_params(params, latent_dim)

    out = decoder_forward(x, padded_params, out_dim=filters[-1])
    out = jax.block_until_ready(out)

    assert out.shape == (batch, filters[-1]), out.shape

    # Exact-math check (same bf16/f32 mixed precision as the kernel).
    ref_bf16 = decoder_forward_ref_bf16(x, params)
    assert jnp.allclose(out, ref_bf16, atol=1e-3, rtol=1e-3), \
        "mismatch vs matched-precision reference"

    # Module-semantics check against the full-f32 PyTorch-equivalent path
    # (loose tolerance: weights were cast to bf16 for the MXU).
    ref_f32 = decoder_forward_ref_f32(x, params)
    assert jnp.allclose(out, ref_f32, atol=1e-1, rtol=1e-1), \
        "mismatch vs f32 reference"

    print("KERNEL_OK")
</pallas_src>

<mosaic_0001>
module attributes {stable_mosaic.version = 11 : i64} {
  func.func @_fused_decoder_kernel(%arg0: i32, %arg1: memref<8x32xbf16, #tpu.memory_space<vmem>>, %arg2: memref<32x128xbf16, #tpu.memory_space<vmem>>, %arg3: memref<1x128xf32, #tpu.memory_space<vmem>>, %arg4: memref<128x128xbf16, #tpu.memory_space<vmem>>, %arg5: memref<1x128xf32, #tpu.memory_space<vmem>>, %arg6: memref<128x128xbf16, #tpu.memory_space<vmem>>, %arg7: memref<1x128xf32, #tpu.memory_space<vmem>>, %arg8: memref<8x128xf32, #tpu.memory_space<vmem>>) attributes {dimension_semantics = [#tpu.dimension_semantics<parallel>], iteration_bounds = array<i64: 1>, scalar_prefetch = 0 : i64, scratch_operands = 0 : i64, tpu.core_type = #tpu.core_type<tc>, window_params = [{transform_indices = @transform_0, window_bounds = array<i64: 8, 32>}, {pipeline_mode = #tpu.pipeline_mode<synchronous>, transform_indices = @transform_1, window_bounds = array<i64: 32, 128>}, {pipeline_mode = #tpu.pipeline_mode<synchronous>, transform_indices = @transform_2, window_bounds = array<i64: 1, 128>}, {pipeline_mode = #tpu.pipeline_mode<synchronous>, transform_indices = @transform_3, window_bounds = array<i64: 128, 128>}, {pipeline_mode = #tpu.pipeline_mode<synchronous>, transform_indices = @transform_4, window_bounds = array<i64: 1, 128>}, {pipeline_mode = #tpu.pipeline_mode<synchronous>, transform_indices = @transform_5, window_bounds = array<i64: 128, 128>}, {pipeline_mode = #tpu.pipeline_mode<synchronous>, transform_indices = @transform_6, window_bounds = array<i64: 1, 128>}, {transform_indices = @transform_7, window_bounds = array<i64: 8, 128>}]} {
    %c0 = arith.constant 0 : index
    %c0_0 = arith.constant 0 : index
    %0 = vector.load %arg1[%c0, %c0_0] : memref<8x32xbf16, #tpu.memory_space<vmem>>, vector<8x32xbf16>
    %c0_1 = arith.constant 0 : index
    %c0_2 = arith.constant 0 : index
    %1 = vector.load %arg2[%c0_1, %c0_2] : memref<32x128xbf16, #tpu.memory_space<vmem>>, vector<32x128xbf16>
    %cst = arith.constant dense<0.000000e+00> : vector<8x128xf32>
    %2 = tpu.matmul %0, %1, %cst {dimension_numbers = #tpu.dot_dimension_numbers<[1], [0], [0], [1], [0, 0, 1, 1], [], []>} : vector<8x32xbf16>, vector<32x128xbf16>, vector<8x128xf32> -> vector<8x128xf32>
    %c0_3 = arith.constant 0 : index
    %c0_4 = arith.constant 0 : index
    %3 = vector.load %arg3[%c0_3, %c0_4] : memref<1x128xf32, #tpu.memory_space<vmem>>, vector<1x128xf32>
    %4 = vector.broadcast %3 : vector<1x128xf32> to vector<8x128xf32>
    %5 = arith.addf %2, %4 : vector<8x128xf32>
    %cst_5 = arith.constant 0.000000e+00 : f32
    %6 = vector.broadcast %cst_5 : f32 to vector<8x128xf32>
    %7 = arith.maximumf %5, %6 : vector<8x128xf32>
    %8 = arith.truncf %7 : vector<8x128xf32> to vector<8x128xbf16>
    %c0_6 = arith.constant 0 : index
    %c0_7 = arith.constant 0 : index
    %9 = vector.load %arg4[%c0_6, %c0_7] : memref<128x128xbf16, #tpu.memory_space<vmem>>, vector<128x128xbf16>
    %cst_8 = arith.constant dense<0.000000e+00> : vector<8x128xf32>
    %10 = tpu.matmul %8, %9, %cst_8 {dimension_numbers = #tpu.dot_dimension_numbers<[1], [0], [0], [1], [0, 0, 1, 1], [], []>} : vector<8x128xbf16>, vector<128x128xbf16>, vector<8x128xf32> -> vector<8x128xf32>
    %c0_9 = arith.constant 0 : index
    %c0_10 = arith.constant 0 : index
    %11 = vector.load %arg5[%c0_9, %c0_10] : memref<1x128xf32, #tpu.memory_space<vmem>>, vector<1x128xf32>
    %12 = vector.broadcast %11 : vector<1x128xf32> to vector<8x128xf32>
    %13 = arith.addf %10, %12 : vector<8x128xf32>
    %cst_11 = arith.constant 0.000000e+00 : f32
    %14 = vector.broadcast %cst_11 : f32 to vector<8x128xf32>
    %15 = arith.maximumf %13, %14 : vector<8x128xf32>
    %16 = arith.truncf %15 : vector<8x128xf32> to vector<8x128xbf16>
    %c0_12 = arith.constant 0 : index
    %c0_13 = arith.constant 0 : index
    %17 = vector.load %arg6[%c0_12, %c0_13] : memref<128x128xbf16, #tpu.memory_space<vmem>>, vector<128x128xbf16>
    %cst_14 = arith.constant dense<0.000000e+00> : vector<8x128xf32>
    %18 = tpu.matmul %16, %17, %cst_14 {dimension_numbers = #tpu.dot_dimension_numbers<[1], [0], [0], [1], [0, 0, 1, 1], [], []>} : vector<8x128xbf16>, vector<128x128xbf16>, vector<8x128xf32> -> vector<8x128xf32>
    %c0_15 = arith.constant 0 : index
    %c0_16 = arith.constant 0 : index
    %19 = vector.load %arg7[%c0_15, %c0_16] : memref<1x128xf32, #tpu.memory_space<vmem>>, vector<1x128xf32>
    %20 = vector.broadcast %19 : vector<1x128xf32> to vector<8x128xf32>
    %21 = arith.addf %18, %20 : vector<8x128xf32>
    %cst_17 = arith.constant 0.000000e+00 : f32
    %22 = vector.broadcast %cst_17 : f32 to vector<8x128xf32>
    %23 = arith.maximumf %21, %22 : vector<8x128xf32>
    %c0_18 = arith.constant 0 : index
    %c0_19 = arith.constant 0 : index
    %24 = vector.load %arg8[%c0_18, %c0_19] : memref<8x128xf32, #tpu.memory_space<vmem>>, vector<8x128xf32>
    tpu.vector_store %arg8[%c0_18, %c0_19], %23 {strides = array<i32>} : memref<8x128xf32, #tpu.memory_space<vmem>>, vector<8x128xf32>,
    return
  }
  func.func @transform_0(%arg0: i32) -> (i32, i32) {
    %c0_i32 = arith.constant 0 : i32
    %c0_i32_0 = arith.constant 0 : i32
    return %arg0, %c0_i32 : i32, i32
  }
  func.func @transform_1(%arg0: i32) -> (i32, i32) {
    %c0_i32 = arith.constant 0 : i32
    %c0_i32_0 = arith.constant 0 : i32
    %c0_i32_1 = arith.constant 0 : i32
    return %c0_i32, %c0_i32_0 : i32, i32
  }
  func.func @transform_2(%arg0: i32) -> (i32, i32) {
    %c0_i32 = arith.constant 0 : i32
    %c0_i32_0 = arith.constant 0 : i32
    %c0_i32_1 = arith.constant 0 : i32
    return %c0_i32, %c0_i32_0 : i32, i32
  }
  func.func @transform_3(%arg0: i32) -> (i32, i32) {
    %c0_i32 = arith.constant 0 : i32
    %c0_i32_0 = arith.constant 0 : i32
    %c0_i32_1 = arith.constant 0 : i32
    return %c0_i32, %c0_i32_0 : i32, i32
  }
  func.func @transform_4(%arg0: i32) -> (i32, i32) {
    %c0_i32 = arith.constant 0 : i32
    %c0_i32_0 = arith.constant 0 : i32
    %c0_i32_1 = arith.constant 0 : i32
    return %c0_i32, %c0_i32_0 : i32, i32
  }
  func.func @transform_5(%arg0: i32) -> (i32, i32) {
    %c0_i32 = arith.constant 0 : i32
    %c0_i32_0 = arith.constant 0 : i32
    %c0_i32_1 = arith.constant 0 : i32
    return %c0_i32, %c0_i32_0 : i32, i32
  }
  func.func @transform_6(%arg0: i32) -> (i32, i32) {
    %c0_i32 = arith.constant 0 : i32
    %c0_i32_0 = arith.constant 0 : i32
    %c0_i32_1 = arith.constant 0 : i32
    return %c0_i32, %c0_i32_0 : i32, i32
  }
  func.func @transform_7(%arg0: i32) -> (i32, i32) {
    %c0_i32 = arith.constant 0 : i32
    %c0_i32_0 = arith.constant 0 : i32
    return %arg0, %c0_i32 : i32, i32
  }
}

</mosaic_0001>

<bundles_post_ra>
// kernel: decoder_forward.1
= control target key start
LH: loop header
LB: loop body
LE: loop exit
PB: predicated region body
PF: predicated region fallthrough
CT: control target
= control target key end

     0   :  { %12 = vsyncpa [#allocation3], 0  ;;  %s740_s0 = inlined_call_operand.vmem [shape: bf16[8,32], index: 0, kind: input, shape index: {}]   ;;  %s741_s1 = inlined_call_operand.hbm [shape: bf16[32,128], index: 1, kind: input, shape index: {}]   ;;  %s742_s2 = inlined_call_operand.vmem [shape: f32[1,128], index: 2, kind: input, shape index: {}]   ;;  %s743_s3 = inlined_call_operand.hbm [shape: bf16[128,128], index: 3, kind: input, shape index: {}]   ;;  %s744_s4 = inlined_call_operand.vmem [shape: f32[1,128], index: 4, kind: input, shape index: {}]   ;;  %s745_s5 = inlined_call_operand.hbm [shape: bf16[128,128], index: 5, kind: input, shape index: {}]   ;;  %s746_s6 = inlined_call_operand.vmem [shape: f32[1,128], index: 6, kind: input, shape index: {}]   ;;  %s747_s7 = inlined_call_operand.hbm [shape: f32[8,128], index: 7, kind: output, shape index: {}]  }
   0x1   :  { %13 = vsyncpa [#allocation6], 0 }
   0x2   :  { %14 = vsyncpa [#allocation4], 0  ;;  %s592_s24 = smov [#allocation5]   ;;  %s593_s26 = smov [#allocation2]  }
   0x3   :  { %s36_s25 = sshll.u32 %s592_s24, 4  ;;  %s22_s27 = sshll.u32 %s593_s26, 4  ;;  %s37_s25 = int_to_ptr.vmem [resolvable:$true] %s36_s25  ;;  %s640_s27 = int_to_ptr.vmem [resolvable:$true] %s22_s27 }
   0x4   :  { %s498_s30 = scalar_lea.hbm %s743_s3, 1024 }
   0x5   :  { %p499_p0 = scmp.ne.s32.totalorder %s743_s3, %s498_s30  ;;  %p502_p1 = scmp.lt.u32.totalorder %s498_s30, %s743_s3 }
   0x7   :  { %p504_p2 = pnand %p502_p1, %p499_p0 }
   0x9   :  { %507 = shalt.err (!%p504_p2)
}
   0xa   :  { %s508_s12 = scalar_lea.vmem %s37_s25, 1024  ;;  %p513_p4 = scmp.lt.s32.totalorder %s37_s25, %s37_s25 }
   0xb   :  { %p509_p3 = scmp.ne.s32.totalorder %s37_s25, %s508_s12  ;;  %p514_p5 = scmp.lt.s32.totalorder %s508_s12, %s508_s12 }
   0xd   :  { %p515_p6 = por %p514_p5, %p513_p4 }
   0xf   :  { %p516_p7 = pnand %p515_p6, %p509_p3 }
  0x11   :  { %519 = shalt.err (!%p516_p7)
}
  0x12   :  { %s594_s13 = smov 64   ;;  %s595_s14 = smov 4  }
  0x13   :  { %42 = dma.hbm_to_vmem [thread:$0]  %s743_s3, 1024, %s37_s25, [#allocation6], %s594_s13, %s594_s13, %s595_s14  }
  0x14   :  { %s520_s19 = scalar_lea.hbm %s741_s1, 256 }
  0x15   :  { %p521_p8 = scmp.ne.s32.totalorder %s741_s1, %s520_s19  ;;  %p524_p9 = scmp.lt.u32.totalorder %s520_s19, %s741_s1 }
  0x17   :  { %p526_p10 = pnand %p524_p9, %p521_p8 }
  0x19   :  { %529 = shalt.err (!%p526_p10)
}
  0x1a   :  { %s530_s24 = scalar_lea.vmem %s640_s27, 256  ;;  %p535_p12 = scmp.lt.s32.totalorder %s640_s27, %s640_s27 }
  0x1b   :  { %p531_p11 = scmp.ne.s32.totalorder %s640_s27, %s530_s24  ;;  %p536_p13 = scmp.lt.s32.totalorder %s530_s24, %s530_s24 }
  0x1d   :  { %p537_p0 = por %p536_p13, %p535_p12 }
  0x1f   :  { %p538_p1 = pnand %p537_p0, %p531_p11 }
  0x21   :  { %541 = shalt.err (!%p538_p1)
}
  0x22   :  { %28 = dma.hbm_to_vmem [thread:$0]  %s741_s1, 256, %s640_s27, [#allocation3], %s594_s13, %s594_s13, %s595_s14  }
  0x23   :  { %s596_s26 = smov [#allocation7]   ;;  %s542_s8 = scalar_lea.hbm %s745_s5, 1024 }
  0x24   :  { %s50_s28 = sshll.u32 %s596_s26, 4  ;;  %p543_p2 = scmp.ne.s32.totalorder %s745_s5, %s542_s8  ;;  %s51_s28 = int_to_ptr.vmem [resolvable:$true] %s50_s28 }
  0x25   :  { %p546_p3 = scmp.lt.u32.totalorder %s542_s8, %s745_s5 }
  0x27   :  { %p548_p4 = pnand %p546_p3, %p543_p2 }
  0x29   :  { %551 = shalt.err (!%p548_p4)
}
  0x2a   :  { %s552_s15 = scalar_lea.vmem %s51_s28, 1024  ;;  %p557_p6 = scmp.lt.s32.totalorder %s51_s28, %s51_s28 }
  0x2b   :  { %p553_p5 = scmp.ne.s32.totalorder %s51_s28, %s552_s15  ;;  %p558_p7 = scmp.lt.s32.totalorder %s552_s15, %s552_s15 }
  0x2d   :  { %p559_p8 = por %p558_p7, %p557_p6 }
  0x2f   :  { %p560_p9 = pnand %p559_p8, %p553_p5 }
  0x31   :  { %563 = shalt.err (!%p560_p9)
}
  0x32   :  { %56 = dma.hbm_to_vmem [thread:$0]  %s745_s5, 1024, %s51_s28, [#allocation6], %s594_s13, %s594_s13, %s595_s14  }
  0x33   :  { %586 = dma.done.wait [#allocation3], 256  }
  0x34   :  { %587 = vsyncadd [#allocation3], 4294967040 }
  0x35   :  { %588 = dma.done.wait [#allocation6], 2048  }
  0x36   :  { %589 = vsyncadd [#allocation6], 4294965248  ;;  %v597_v0 = vmov 0.0   ;;  %vm598_vm0 = vmmov 0   ;;  %v480_v1 = vld [vmem:[#allocation2] sm:$0xff]   ;;  %v481_v2 = vld [vmem:[#allocation2 + $0x8] sm:$0xff]  }
  0x37   :  { %424 = vmatprep.subr.bf16.mxu0 %v597_v0  ;;  %428 = vmatprep.mubr.msk.bf16.mxu0 %vm598_vm0, %v597_v0  ;;  %v482_v3 = vld [vmem:[#allocation5] sm:$0xff]   ;;  %vm93_vm1 = vcmask 261120   ;;  %v483_v4 = vld [vmem:[#allocation5 + $0x8] sm:$0xff]   ;;  %v69_v5 = vld [vmem:[%s740_s0] sm:$0xf]  ;;  %s599_s19 = smov [#allocation8]  }
  0x38   :  { %432 = vmatprep.subr.bf16.mxu1 %v597_v0  ;;  %448 = vmatprep.mubr.msk.bf16.mxu1 %vm598_vm0, %v597_v0  ;;  %v484_v6 = vld [vmem:[#allocation5 + $0x10] sm:$0xff]   ;;  %v485_v7 = vld [vmem:[#allocation5 + $0x18] sm:$0xff]   ;;  %v486_v8 = vld [vmem:[#allocation5 + $0x20] sm:$0xff]   ;;  %s371_s20 = sshll.u32 %s599_s19, 4  ;;  %s372_s20 = int_to_ptr.vmem [resolvable:$true] %s371_s20 }
  0x39   :  { %425 = vmatpush3.bf16.msra.mxu0 %v480_v1  ;;  %433 = vmatpush3.bf16.msra.mxu1 %v482_v3  ;;  %v487_v9 = vld [vmem:[#allocation5 + $0x28] sm:$0xff]   ;;  %v488_v10 = vld [vmem:[#allocation5 + $0x30] sm:$0xff]   ;;  %v489_v11 = vld [vmem:[#allocation5 + $0x38] sm:$0xff]   ;;  %p569_p11 = scmp.lt.s32.totalorder %s372_s20, %s372_s20 }
  0x3a   :  { %426 = vmatprep.subr.bf16.mxu0 %v597_v0  ;;  %434 = vmatprep.subr.bf16.mxu1 %v597_v0  ;;  %v490_v12 = vld [vmem:[#allocation7] sm:$0xff]   ;;  %v491_v13 = vld [vmem:[#allocation7 + $0x8] sm:$0xff]   ;;  %v492_v14 = vld [vmem:[#allocation7 + $0x10] sm:$0xff]  }
  0x3b   :  { %v493_v15 = vld [vmem:[#allocation7 + $0x18] sm:$0xff]   ;;  %v494_v16 = vld [vmem:[#allocation7 + $0x20] sm:$0xff]   ;;  %v495_v17 = vld [vmem:[#allocation7 + $0x28] sm:$0xff]  }
  0x3c   :  { %v381_v18 = vld [vmem:[%s742_s2] ss:$0 sm:$0xff]  ;;  %v497_v27 = vld [vmem:[#allocation7 + $0x38] sm:$0xff]  }
  0x3d   :  { %427 = vmatpush3.bf16.msra.mxu0 %v481_v2  ;;  %435 = vmatpush3.bf16.msra.mxu1 %v483_v4  ;;  %v496_v26 = vld [vmem:[#allocation7 + $0x30] sm:$0xff]  }
  0x3e   :  { %452 = vmatprep.subr.bf16.mxu0 %v597_v0  ;;  %436 = vmatprep.subr.bf16.mxu1 %v597_v0  ;;  %v385_v28 = vld [vmem:[%s744_s4] ss:$0 sm:$0xff]  ;;  %s564_s4 = scalar_lea.vmem %s372_s20, 128 }
  0x3f   :  { %v394_v36 = vld [vmem:[%s746_s6] ss:$0 sm:$0xff]  ;;  %p565_p10 = scmp.ne.s32.totalorder %s372_s20, %s564_s4  ;;  %p570_p12 = scmp.lt.s32.totalorder %s564_s4, %s564_s4 }
  0x40   :  { %429 = vmatmul.mubr.msk.bf16.vlgmr.msra.gmra.mrb[0].mxu0 %vm93_vm1, %v69_v5 }
  0x41   :  { %468 = vmatprep.mubr.msk.bf16.mxu0 %vm598_vm0, %v597_v0  ;;  %437 = vmatpush3.bf16.msra.mxu1 %v484_v6  ;;  %p571_p13 = por %p570_p12, %p569_p11 }
  0x42   :  { %438 = vmatprep.subr.bf16.mxu1 %v597_v0  ;;  %453 = vmatpush3.bf16.msra.mxu0 %v490_v12 }
  0x43   :  { %454 = vmatprep.subr.bf16.mxu0 %v597_v0  ;;  %p572_p0 = pnand %p571_p13, %p565_p10 }
  0x45   :  { %439 = vmatpush3.bf16.msra.mxu1 %v485_v7 }
  0x46   :  { %440 = vmatprep.subr.bf16.mxu1 %v597_v0  ;;  %455 = vmatpush3.bf16.msra.mxu0 %v491_v13 }
  0x47   :  { %456 = vmatprep.subr.bf16.mxu0 %v597_v0 }
  0x49   :  { %441 = vmatpush3.bf16.msra.mxu1 %v486_v8 }
  0x4a   :  { %442 = vmatprep.subr.bf16.mxu1 %v597_v0  ;;  %457 = vmatpush3.bf16.msra.mxu0 %v492_v14 }
  0x4b   :  { %458 = vmatprep.subr.bf16.mxu0 %v597_v0 }
  0x4d   :  { %443 = vmatpush3.bf16.msra.mxu1 %v487_v9 }
  0x4e   :  { %444 = vmatprep.subr.bf16.mxu1 %v597_v0  ;;  %459 = vmatpush3.bf16.msra.mxu0 %v493_v15 }
  0x4f   :  { %460 = vmatprep.subr.bf16.mxu0 %v597_v0 }
  0x51   :  { %445 = vmatpush3.bf16.msra.mxu1 %v488_v10 }
  0x52   :  { %446 = vmatprep.subr.bf16.mxu1 %v597_v0  ;;  %461 = vmatpush3.bf16.msra.mxu0 %v494_v16 }
  0x53   :  { %462 = vmatprep.subr.bf16.mxu0 %v597_v0 }
  0x55   :  { %447 = vmatpush3.bf16.msra.mxu1 %v489_v11 }
  0x56   :  { %463 = vmatpush3.bf16.msra.mxu0 %v495_v17 }
  0x57   :  { %464 = vmatprep.subr.bf16.mxu0 %v597_v0 }
  0x5a   :  { %465 = vmatpush3.bf16.msra.mxu0 %v496_v26 }
  0x5b   :  { %466 = vmatprep.subr.bf16.mxu0 %v597_v0 }
  0x5e   :  { %467 = vmatpush3.bf16.msra.mxu0 %v497_v27 }
 0x113   :  { %v131_v19 = vpop.f32.mrb[0].mxu0 }
 0x114   :  { %v132_v20 = vadd.f32 %v381_v18, %v131_v19  ;;  %v430_v21 = vpop.f32.mrb[1].mxu0 }
 0x115   :  { %v134_v22 = vpop.f32.mrb[2].mxu0 }
 0x116   :  { %v137_v23 = vmax.f32 %v132_v20, 0.0  ;;  %v431_v24 = vpop.f32.mrb[3].mxu0 }
 0x118   :  { %v138_v25 = vpack.c.bf16 %v137_v23, %v137_v23 }
 0x11a   :  { %449 = vmatmul.mubr.bf16.vlgmr.msra.gmra.mrb[0].mxu1 %v138_v25 }
 0x1ed   :  { %v244_v29 = vpop.f32.mrb[0].mxu1 }
 0x1ee   :  { %v245_v30 = vadd.f32 %v385_v28, %v244_v29  ;;  %v450_v31 = vpop.f32.mrb[1].mxu1 }
 0x1ef   :  { %v247_v32 = vpop.f32.mrb[2].mxu1 }
 0x1f0   :  { %v250_v33 = vmax.f32 %v245_v30, 0.0  ;;  %v451_v34 = vpop.f32.mrb[3].mxu1 }
 0x1f2   :  { %v251_v35 = vpack.c.bf16 %v250_v33, %v250_v33 }
 0x1f4   :  { %469 = vmatmul.mubr.bf16.vlgmr.msra.gmra.mrb[4].mxu0 %v251_v35 }
 0x2c7   :  { %v357_v37 = vpop.f32.mrb[4].mxu0 }
 0x2c8   :  { %v358_v38 = vadd.f32 %v394_v36, %v357_v37  ;;  %v470_v39 = vpop.f32.mrb[5].mxu0 }
 0x2c9   :  { %v360_v40 = vpop.f32.mrb[6].mxu0 }
 0x2ca   :  { %v363_v41 = vmax.f32 %v358_v38, 0.0  ;;  %v471_v42 = vpop.f32.mrb[7].mxu0 }
 0x2cc   :  { %364 = vst [vmem:[#allocation8] sm:$0xff] %v363_v41 }
 0x2cd   :  { %575 = shalt.err (!%p572_p0)
}
 0x2ce   :  { %s576_s6 = scalar_lea.hbm %s747_s7, 128 }
 0x2cf   :  { %p577_p1 = scmp.ne.s32.totalorder %s747_s7, %s576_s6  ;;  %p580_p2 = scmp.lt.u32.totalorder %s576_s6, %s747_s7 }
 0x2d1   :  { %p582_p3 = pnand %p580_p2, %p577_p1 }
 0x2d3   :  { %585 = shalt.err (!%p582_p3)
}
 0x2d4   :  { %374 = dma.vmem_to_hbm [thread:$0]  %s372_s20, 128, %s747_s7, [#allocation4]  }
 0x2d5   :  { %590 = dma.done.wait [#allocation4], 128  }
 0x2d6   :  { %591 = vsyncadd [#allocation4], 4294967168 }
 0x2d7   :  { %378 = vsyncpa [#allocation3], 1 }
 0x2d8   :  { %379 = vsyncpa [#allocation6], 1 }
 0x2d9   :  { %380 = vsyncpa [#allocation4], 1 }

</bundles_post_ra>
